<compile_context>
chip_gen: v7x
topology: tpu7x:2x2x1
jax: 0.10.0
libtpu: 0.0.40
codegen_flags: <defaults>
</compile_context>

<pallas_src>
import jax
import jax.numpy as jnp
from jax.experimental import pallas as pl
from jax.experimental.pallas import tpu as pltpu


def _round_up(x, m):
    return ((x + m - 1) // m) * m


def _residual_linear_folded_kernel(x_ref, w_ref, b_ref, o_ref):
    """o = x @ (W + I) + b.  x is (tm, Kp) K-resident, W is (Kp, tn)."""
    acc = jnp.dot(x_ref[...], w_ref[...], preferred_element_type=jnp.float32)
    o_ref[...] = (acc + b_ref[...].astype(jnp.float32)).astype(o_ref.dtype)


def _residual_linear_explicit_kernel(x_ref, w_ref, b_ref, r_ref, o_ref):
    """o = x @ W + b + r, residual added exactly in f32 in the epilogue."""
    acc = jnp.dot(x_ref[...], w_ref[...], preferred_element_type=jnp.float32)
    o_ref[...] = (
        acc + b_ref[...].astype(jnp.float32) + r_ref[...].astype(jnp.float32)
    ).astype(o_ref.dtype)


def residual_linear(
    x,
    w,
    b,
    *,
    tm=512,
    tn=512,
    compute_dtype=jnp.bfloat16,
    fold_residual=True,
    vmem_budget_bytes=44 * 1024 * 1024,   # keeps us inside v7x's 64 MiB VMEM
):
    """Residual(Linear)(x):  x @ W + b + x.

    x: (B, S, H), w: (H, H), b: (H,) -> (B, S, H)

    compute_dtype: dtype for the matmul operands (default bf16 for native MXU
                   throughput); accumulation / bias stay float32.
    fold_residual: fold the identity into W (x read from HBM once, no residual
                   stream).  Set False to add the residual exactly in f32 in
                   the epilogue (costs a second x stream).
    """
    B, S, H = x.shape
    M = B * S
    out_dtype = x.dtype
    mm_dtype = jnp.dtype(compute_dtype) if compute_dtype is not None else jnp.dtype(x.dtype)
    op_bytes = mm_dtype.itemsize
    out_bytes = jnp.dtype(out_dtype).itemsize

    # ---- tile selection: clamp to the (8/128-aligned) problem, then shrink
    # ---- until the double-buffered footprint fits the VMEM budget.
    tm = min(tm, _round_up(M, 8))
    tn = min(tn, _round_up(H, 128))
    Kp = _round_up(H, 128)

    def footprint(tm_, tn_):
        f = 2 * tm_ * Kp * op_bytes          # x (K-resident, double-buffered)
        f += 2 * Kp * tn_ * op_bytes         # W (+I)
        f += 2 * tm_ * tn_ * out_bytes       # output
        f += tm_ * tn_ * 4                   # in-kernel f32 accumulator temp
        f += 2 * tn_ * 4                     # bias (f32)
        if not fold_residual:
            f += 2 * tm_ * tn_ * out_bytes   # explicit residual stream
        return f

    while footprint(tm, tn) > vmem_budget_bytes and (tm > 8 or tn > 128):
        if tm >= tn and tm > 8:
            tm = max(8, ((tm // 2) // 8) * 8)
        elif tn > 128:
            tn = max(128, ((tn // 2) // 128) * 128)
        else:
            break

    Mp = _round_up(M, tm)   # padded rows
    Np = _round_up(H, tn)   # padded output columns (lane-dense)

    # ---- activation stream (pads / casts are no-ops for aligned inputs).
    x2d = x.reshape(M, H)
    x_mm = x2d
    if Mp != M or Kp != H:
        x_mm = jnp.pad(x_mm, ((0, Mp - M), (0, Kp - H)))
    if x_mm.dtype != mm_dtype:
        x_mm = x_mm.astype(mm_dtype)

    # ---- weight / bias prep (fold residual, pad, cast).  Depends only on the
    # weights and static shapes: under jit it constant-folds / is cached, so it
    # is not re-paid per token batch.
    w_eff = w + jnp.eye(H, dtype=w.dtype) if fold_residual else w
    if Kp != H or Np != H:
        w_eff = jnp.pad(w_eff, ((0, Kp - H), (0, Np - H)))
    if w_eff.dtype != mm_dtype:
        w_eff = w_eff.astype(mm_dtype)
    b_p = b.reshape(1, H).astype(jnp.float32)
    if Np != H:
        b_p = jnp.pad(b_p, ((0, 0), (0, Np - H)))

    grid = (Mp // tm, Np // tn)

    in_specs = [
        # x: full K extent, block index constant across j -> DMA'd once per row tile.
        pl.BlockSpec((tm, Kp), lambda i, j: (i, 0)),
        # W (+ I): full K extent per output-column tile.
        pl.BlockSpec((Kp, tn), lambda i, j: (0, j)),
        # bias: one lane-row per output-column tile.
        pl.BlockSpec((1, tn), lambda i, j: (0, j)),
    ]
    inputs = [x_mm, w_eff, b_p]
    kernel = _residual_linear_folded_kernel

    if not fold_residual:
        x_res = x2d
        if Mp != M or Np != H:
            x_res = jnp.pad(x_res, ((0, Mp - M), (0, Np - H)))
        in_specs.append(pl.BlockSpec((tm, tn), lambda i, j: (i, j)))
        inputs.append(x_res)
        kernel = _residual_linear_explicit_kernel

    flops = 2 * M * H * H
    bytes_accessed = (
        M * Kp * op_bytes + Kp * Np * op_bytes + Np * 4 + M * Np * out_bytes
        + (0 if fold_residual else M * Np * out_bytes)
    )
    vmem_limit = int(
        min(64 * 1024 * 1024,
            max(16 * 1024 * 1024, footprint(tm, tn) + 8 * 1024 * 1024))
    )

    out = pl.pallas_call(
        kernel,
        out_shape=jax.ShapeDtypeStruct((Mp, Np), out_dtype),
        grid_spec=pltpu.PrefetchScalarGridSpec(
            num_scalar_prefetch=0,
            grid=grid,
            in_specs=in_specs,
            out_specs=pl.BlockSpec((tm, tn), lambda i, j: (i, j)),
        ),
        compiler_params=pltpu.CompilerParams(
            dimension_semantics=("parallel", "parallel"),
            vmem_limit_bytes=vmem_limit,
        ),
        cost_estimate=pl.CostEstimate(
            flops=flops, transcendentals=0, bytes_accessed=bytes_accessed
        ),
    )(*inputs)

    return out[:M, :H].reshape(B, S, H)


if __name__ == "__main__":
    key = jax.random.PRNGKey(0)
    kx, kw, kb = jax.random.split(key, 3)

    batch, seq, hidden = 2, 8, 32
    x = jax.random.normal(kx, (batch, seq, hidden), dtype=jnp.float32)

    # Deterministic parameter init for fn = Linear(hidden, hidden)
    # (matches nn.Linear's uniform(-1/sqrt(H), 1/sqrt(H)) convention).
    bound = 1.0 / jnp.sqrt(hidden)
    w = jax.random.uniform(kw, (hidden, hidden), jnp.float32, -bound, bound)
    b = jax.random.uniform(kb, (hidden,), jnp.float32, -bound, bound)

    # Pure-JAX reference of the Residual semantics: fn(x) + x
    ref = jnp.einsum("bsh,hk->bsk", x, w) + b + x

    # 1) Precision path: f32 operands, residual added exactly in the epilogue.
    out_f32 = residual_linear(x, w, b, compute_dtype=jnp.float32,
                              fold_residual=False)
    jax.block_until_ready(out_f32)
    assert out_f32.shape == ref.shape
    assert jnp.allclose(out_f32, ref, atol=1e-5, rtol=1e-5), "f32 path mismatch"

    # 2) Default fast path: bf16 operands, residual folded into W (+ identity).
    out_fast = residual_linear(x, w, b)
    jax.block_until_ready(out_fast)
    assert out_fast.shape == ref.shape
    assert jnp.allclose(out_fast, ref, atol=1e-1, rtol=1e-1), "bf16 path mismatch"

    print("KERNEL_OK")
</pallas_src>

<mosaic_0001>
module attributes {stable_mosaic.version = 11 : i64} {
  func.func @_residual_linear_explicit_kernel(%arg0: i32, %arg1: i32, %arg2: memref<16x128xf32, #tpu.memory_space<vmem>>, %arg3: memref<128x128xf32, #tpu.memory_space<vmem>>, %arg4: memref<1x128xf32, #tpu.memory_space<vmem>>, %arg5: memref<16x128xf32, #tpu.memory_space<vmem>>, %arg6: memref<16x128xf32, #tpu.memory_space<vmem>>) attributes {dimension_semantics = [#tpu.dimension_semantics<parallel>, #tpu.dimension_semantics<parallel>], iteration_bounds = array<i64: 1, 1>, scalar_prefetch = 0 : i64, scratch_operands = 0 : i64, tpu.core_type = #tpu.core_type<tc>, window_params = [{transform_indices = @transform_0, window_bounds = array<i64: 16, 128>}, {transform_indices = @transform_1, window_bounds = array<i64: 128, 128>}, {transform_indices = @transform_2, window_bounds = array<i64: 1, 128>}, {transform_indices = @transform_3, window_bounds = array<i64: 16, 128>}, {transform_indices = @transform_4, window_bounds = array<i64: 16, 128>}]} {
    %c0 = arith.constant 0 : index
    %c0_0 = arith.constant 0 : index
    %0 = vector.load %arg2[%c0, %c0_0] : memref<16x128xf32, #tpu.memory_space<vmem>>, vector<16x128xf32>
    %c0_1 = arith.constant 0 : index
    %c0_2 = arith.constant 0 : index
    %1 = vector.load %arg3[%c0_1, %c0_2] : memref<128x128xf32, #tpu.memory_space<vmem>>, vector<128x128xf32>
    %cst = arith.constant dense<0.000000e+00> : vector<16x128xf32>
    %2 = tpu.matmul %0, %1, %cst {dimension_numbers = #tpu.dot_dimension_numbers<[1], [0], [0], [1], [0, 0, 1, 1], [], []>} : vector<16x128xf32>, vector<128x128xf32>, vector<16x128xf32> -> vector<16x128xf32>
    %c0_3 = arith.constant 0 : index
    %c0_4 = arith.constant 0 : index
    %3 = vector.load %arg4[%c0_3, %c0_4] : memref<1x128xf32, #tpu.memory_space<vmem>>, vector<1x128xf32>
    %4 = vector.broadcast %3 : vector<1x128xf32> to vector<16x128xf32>
    %5 = arith.addf %2, %4 : vector<16x128xf32>
    %c0_5 = arith.constant 0 : index
    %c0_6 = arith.constant 0 : index
    %6 = vector.load %arg5[%c0_5, %c0_6] : memref<16x128xf32, #tpu.memory_space<vmem>>, vector<16x128xf32>
    %7 = arith.addf %5, %6 : vector<16x128xf32>
    %c0_7 = arith.constant 0 : index
    %c0_8 = arith.constant 0 : index
    %8 = vector.load %arg6[%c0_7, %c0_8] : memref<16x128xf32, #tpu.memory_space<vmem>>, vector<16x128xf32>
    tpu.vector_store %arg6[%c0_7, %c0_8], %7 {strides = array<i32>} : memref<16x128xf32, #tpu.memory_space<vmem>>, vector<16x128xf32>,
    return
  }
  func.func @transform_0(%arg0: i32, %arg1: i32) -> (i32, i32) {
    %c0_i32 = arith.constant 0 : i32
    %c0_i32_0 = arith.constant 0 : i32
    return %arg0, %c0_i32 : i32, i32
  }
  func.func @transform_1(%arg0: i32, %arg1: i32) -> (i32, i32) {
    %c0_i32 = arith.constant 0 : i32
    %c0_i32_0 = arith.constant 0 : i32
    return %c0_i32, %arg1 : i32, i32
  }
  func.func @transform_2(%arg0: i32, %arg1: i32) -> (i32, i32) {
    %c0_i32 = arith.constant 0 : i32
    %c0_i32_0 = arith.constant 0 : i32
    return %c0_i32, %arg1 : i32, i32
  }
  func.func @transform_3(%arg0: i32, %arg1: i32) -> (i32, i32) {
    %c0_i32 = arith.constant 0 : i32
    return %arg0, %arg1 : i32, i32
  }
  func.func @transform_4(%arg0: i32, %arg1: i32) -> (i32, i32) {
    %c0_i32 = arith.constant 0 : i32
    return %arg0, %arg1 : i32, i32
  }
}

</mosaic_0001>

<bundles_post_ra>
// kernel: tpu_custom_call.1
= control target key start
LH: loop header
LB: loop body
LE: loop exit
PB: predicated region body
PF: predicated region fallthrough
CT: control target
= control target key end

     0   :  { %9 = vsyncpa [#allocation3], 0  ;;  %s470_s0 = inlined_call_operand.hbm [shape: f32[16,128], index: 0, kind: input, shape index: {}]   ;;  %s471_s1 = inlined_call_operand.hbm [shape: f32[128,128], index: 1, kind: input, shape index: {}]   ;;  %s472_s2 = inlined_call_operand.vmem [shape: f32[1,128], index: 2, kind: input, shape index: {}]   ;;  %s473_s3 = inlined_call_operand.hbm [shape: f32[16,128], index: 3, kind: input, shape index: {}]   ;;  %s474_s4 = inlined_call_operand.hbm [shape: f32[16,128], index: 4, kind: output, shape index: {}]  }
   0x1   :  { %10 = vsyncpa [#allocation6], 0 }
   0x2   :  { %11 = vsyncpa [#allocation4], 0  ;;  %s369_s15 = smov [#allocation5]   ;;  %s370_s17 = smov [#allocation2]  }
   0x3   :  { %s29_s16 = sshll.u32 %s369_s15, 4  ;;  %s17_s18 = sshll.u32 %s370_s17, 4  ;;  %s30_s16 = int_to_ptr.vmem [resolvable:$true] %s29_s16  ;;  %s400_s18 = int_to_ptr.vmem [resolvable:$true] %s17_s18 }
   0x4   :  { %s275_s21 = scalar_lea.hbm %s471_s1, 2048 }
   0x5   :  { %p276_p0 = scmp.ne.s32.totalorder %s471_s1, %s275_s21  ;;  %p279_p1 = scmp.lt.u32.totalorder %s275_s21, %s471_s1 }
   0x7   :  { %p281_p2 = pnand %p279_p1, %p276_p0 }
   0x9   :  { %284 = shalt.err (!%p281_p2)
}
   0xa   :  { %s285_s26 = scalar_lea.vmem %s30_s16, 2048  ;;  %p290_p4 = scmp.lt.s32.totalorder %s30_s16, %s30_s16 }
   0xb   :  { %p286_p3 = scmp.ne.s32.totalorder %s30_s16, %s285_s26  ;;  %p291_p5 = scmp.lt.s32.totalorder %s285_s26, %s285_s26 }
   0xd   :  { %p292_p6 = por %p291_p5, %p290_p4 }
   0xf   :  { %p293_p7 = pnand %p292_p6, %p286_p3 }
  0x11   :  { %296 = shalt.err (!%p293_p7)
}
  0x12   :  { %s371_s27 = smov 128   ;;  %s372_s28 = smov 8  }
  0x13   :  { %35 = dma.hbm_to_vmem [thread:$0]  %s471_s1, 2048, %s30_s16, [#allocation6], %s371_s27, %s371_s27, %s372_s28  }
  0x14   :  { %s297_s7 = scalar_lea.hbm %s470_s0, 256 }
  0x15   :  { %p298_p8 = scmp.ne.s32.totalorder %s470_s0, %s297_s7  ;;  %p301_p9 = scmp.lt.u32.totalorder %s297_s7, %s470_s0 }
  0x17   :  { %p303_p10 = pnand %p301_p9, %p298_p8 }
  0x19   :  { %306 = shalt.err (!%p303_p10)
}
  0x1a   :  { %s307_s12 = scalar_lea.vmem %s400_s18, 256  ;;  %p312_p12 = scmp.lt.s32.totalorder %s400_s18, %s400_s18 }
  0x1b   :  { %p308_p11 = scmp.ne.s32.totalorder %s400_s18, %s307_s12  ;;  %p313_p13 = scmp.lt.s32.totalorder %s307_s12, %s307_s12 }
  0x1d   :  { %p314_p0 = por %p313_p13, %p312_p12 }
  0x1f   :  { %p315_p1 = pnand %p314_p0, %p308_p11 }
  0x21   :  { %318 = shalt.err (!%p315_p1)
}
  0x22   :  { %23 = dma.hbm_to_vmem [thread:$0]  %s470_s0, 256, %s400_s18, [#allocation3], %s371_s27, %s371_s27, %s372_s28  }
  0x23   :  { %s373_s14 = smov [#allocation7]   ;;  %s319_s19 = scalar_lea.hbm %s473_s3, 256 }
  0x24   :  { %s43_s15 = sshll.u32 %s373_s14, 4  ;;  %p320_p2 = scmp.ne.s32.totalorder %s473_s3, %s319_s19  ;;  %s44_s15 = int_to_ptr.vmem [resolvable:$true] %s43_s15 }
  0x25   :  { %p323_p3 = scmp.lt.u32.totalorder %s319_s19, %s473_s3 }
  0x27   :  { %p325_p4 = pnand %p323_p3, %p320_p2 }
  0x29   :  { %328 = shalt.err (!%p325_p4)
}
  0x2a   :  { %s329_s24 = scalar_lea.vmem %s44_s15, 256  ;;  %p334_p6 = scmp.lt.s32.totalorder %s44_s15, %s44_s15 }
  0x2b   :  { %p330_p5 = scmp.ne.s32.totalorder %s44_s15, %s329_s24  ;;  %p335_p7 = scmp.lt.s32.totalorder %s329_s24, %s329_s24 }
  0x2d   :  { %p336_p8 = por %p335_p7, %p334_p6 }
  0x2f   :  { %p337_p9 = pnand %p336_p8, %p330_p5 }
  0x31   :  { %340 = shalt.err (!%p337_p9)
}
  0x32   :  { %49 = dma.hbm_to_vmem [thread:$0]  %s473_s3, 256, %s44_s15, [#allocation6], %s371_s27, %s371_s27, %s372_s28  }
  0x33   :  { %363 = dma.done.wait [#allocation3], 256  }
  0x34   :  { %364 = vsyncadd [#allocation3], 4294967040 }
  0x35   :  { %365 = dma.done.wait [#allocation6], 2304  }
  0x36   :  { %366 = vsyncadd [#allocation6], 4294964992  ;;  %v61_v0 = vld [vmem:[#allocation5] sm:$0xff]  ;;  %v62_v1 = vld [vmem:[#allocation5 + $0x8] sm:$0xff]  ;;  %s374_s26 = smov [#allocation8]  }
  0x37   :  { %v63_v2 = vld [vmem:[#allocation5 + $0x10] sm:$0xff]  ;;  %v237_v3 = vpack.c.bf16 %v62_v1, %v61_v0  ;;  %v64_v4 = vld [vmem:[#allocation5 + $0x18] sm:$0xff]  ;;  %v65_v6 = vld [vmem:[#allocation5 + $0x20] sm:$0xff]  ;;  %s170_s29 = sshll.u32 %s374_s26, 4  ;;  %s171_s29 = int_to_ptr.vmem [resolvable:$true] %s170_s29 }
  0x38   :  { %v241_v5 = vpack.c.bf16 %v64_v4, %v63_v2  ;;  %v66_v7 = vld [vmem:[#allocation5 + $0x28] sm:$0xff]  ;;  %v59_v9 = vld [vmem:[#allocation2] sm:$0xff]  ;;  %v68_v11 = vld [vmem:[#allocation5 + $0x38] sm:$0xff]  ;;  %s341_s30 = scalar_lea.vmem %s171_s29, 256  ;;  %p346_p11 = scmp.lt.s32.totalorder %s171_s29, %s171_s29 }
  0x39   :  { %238 = vmatprep.subr.bf16.mxu0 %v237_v3  ;;  %v245_v8 = vpack.c.bf16 %v66_v7, %v65_v6  ;;  %v67_v10 = vld [vmem:[#allocation5 + $0x30] sm:$0xff]  ;;  %234 = vmatprep.mubr.f32.mxu0 %v59_v9  ;;  %v69_v13 = vld [vmem:[#allocation5 + $0x40] sm:$0xff]  ;;  %v70_v14 = vld [vmem:[#allocation5 + $0x48] sm:$0xff]  ;;  %p342_p10 = scmp.ne.s32.totalorder %s171_s29, %s341_s30  ;;  %p347_p12 = scmp.lt.s32.totalorder %s341_s30, %s341_s30 }
  0x3a   :  { %240 = vmatpush3.bf16.msra.mxu0 %v237_v3  ;;  %v249_v12 = vpack.c.bf16 %v68_v11, %v67_v10  ;;  %v253_v15 = vpack.c.bf16 %v70_v14, %v69_v13  ;;  %v71_v16 = vld [vmem:[#allocation5 + $0x50] sm:$0xff]  ;;  %v72_v17 = vld [vmem:[#allocation5 + $0x58] sm:$0xff]  ;;  %v73_v19 = vld [vmem:[#allocation5 + $0x60] sm:$0xff] }
  0x3b   :  { %242 = vmatprep.subr.bf16.mxu0 %v241_v5  ;;  %v257_v18 = vpack.c.bf16 %v72_v17, %v71_v16  ;;  %v74_v20 = vld [vmem:[#allocation5 + $0x68] sm:$0xff]  ;;  %v75_v22 = vld [vmem:[#allocation5 + $0x70] sm:$0xff]  ;;  %v76_v23 = vld [vmem:[#allocation5 + $0x78] sm:$0xff]  ;;  %p348_p13 = por %p347_p12, %p346_p11 }
  0x3c   :  { %v261_v21 = vpack.c.bf16 %v74_v20, %v73_v19  ;;  %v265_v24 = vpack.c.bf16 %v76_v23, %v75_v22  ;;  %v60_v25 = vld [vmem:[#allocation2 + $0x8] sm:$0xff]  ;;  %v183_v26 = vld [vmem:[%s472_s2] ss:$0 sm:$0xff]  ;;  %v160_v28 = vld [vmem:[#allocation7 + $0x8] sm:$0xff] }
  0x3d   :  { %v159_v31 = vld [vmem:[#allocation7] sm:$0xff]  ;;  %p349_p0 = pnand %p348_p13, %p342_p10 }
  0x3e   :  { %244 = vmatpush3.bf16.msra.mxu0 %v241_v5 }
  0x3f   :  { %246 = vmatprep.subr.bf16.mxu0 %v245_v8 }
  0x42   :  { %248 = vmatpush3.bf16.msra.mxu0 %v245_v8 }
  0x43   :  { %250 = vmatprep.subr.bf16.mxu0 %v249_v12 }
  0x46   :  { %252 = vmatpush3.bf16.msra.mxu0 %v249_v12 }
  0x47   :  { %254 = vmatprep.subr.bf16.mxu0 %v253_v15 }
  0x4a   :  { %256 = vmatpush3.bf16.msra.mxu0 %v253_v15 }
  0x4b   :  { %258 = vmatprep.subr.bf16.mxu0 %v257_v18 }
  0x4e   :  { %260 = vmatpush3.bf16.msra.mxu0 %v257_v18 }
  0x4f   :  { %262 = vmatprep.subr.bf16.mxu0 %v261_v21 }
  0x52   :  { %264 = vmatpush3.bf16.msra.mxu0 %v261_v21 }
  0x53   :  { %266 = vmatprep.subr.bf16.mxu0 %v265_v24 }
  0x56   :  { %268 = vmatpush3.bf16.msra.mxu0 %v265_v24 }
  0x59   :  { %235 = vmatmul.mubr.f32.vlgmr.msra.gmra.mrb[0].mxu0 %v60_v25 }
 0x12c   :  { %v236_v27 = vpop.f32.mrb[0].mxu0 }
 0x12d   :  { %v156_v29 = vadd.f32 %v236_v27, %v183_v26  ;;  %v150_v30 = vpop.f32.mrb[1].mxu0 }
 0x12e   :  { %v151_v32 = vadd.f32 %v183_v26, %v150_v30 }
 0x12f   :  { %v162_v33 = vadd.f32 %v160_v28, %v156_v29 }
 0x130   :  { %v161_v34 = vadd.f32 %v159_v31, %v151_v32 }
 0x131   :  { %164 = vst [vmem:[#allocation8 + $0x8] sm:$0xff] %v162_v33 }
 0x132   :  { %163 = vst [vmem:[#allocation8] sm:$0xff] %v161_v34 }
 0x133   :  { %352 = shalt.err (!%p349_p0)
}
 0x134   :  { %s353_s6 = scalar_lea.hbm %s474_s4, 256 }
 0x135   :  { %p354_p1 = scmp.ne.s32.totalorder %s474_s4, %s353_s6  ;;  %p357_p2 = scmp.lt.u32.totalorder %s353_s6, %s474_s4 }
 0x137   :  { %p359_p3 = pnand %p357_p2, %p354_p1 }
 0x139   :  { %362 = shalt.err (!%p359_p3)
}
 0x13a   :  { %176 = dma.vmem_to_hbm [thread:$0]  %s171_s29, 256, %s474_s4, [#allocation4], %s371_s27, %s371_s27, %s372_s28  }
 0x13b   :  { %367 = dma.done.wait [#allocation4], 256  }
 0x13c   :  { %368 = vsyncadd [#allocation4], 4294967040 }
 0x13d   :  { %180 = vsyncpa [#allocation3], 1 }
 0x13e   :  { %181 = vsyncpa [#allocation6], 1 }
 0x13f   :  { %182 = vsyncpa [#allocation4], 1 }

</bundles_post_ra>
